<compile_context>
chip_gen: v6e
topology: v6e:2x2x1
jax: 0.10.0
libtpu: 0.0.40
codegen_flags: <defaults>
</compile_context>

<pallas_src>
import jax
import jax.numpy as jnp
from jax.experimental import pallas as pl
from jax.experimental.pallas import tpu as pltpu

TB_MAX = 8192  # batch tile; sweepable in the 2048-16384 range


def mlp_kernel(x_ref, w1_ref, b1_ref, w2_ref, b2_ref, o_ref):
    # Layer 1: Linear(25 -> 12), f32 MXU accumulation, bias + ReLU on VPU.
    h = jnp.dot(x_ref[...], w1_ref[...], preferred_element_type=jnp.float32)
    h = jnp.maximum(h + b1_ref[...], 0.0)
    # Layer 2: Linear(12 -> 12). w2/b2 already carry the module's final *10.
    y = jnp.dot(h, w2_ref[...], preferred_element_type=jnp.float32)
    o_ref[...] = jnp.maximum(y + b2_ref[...], 0.0).astype(o_ref.dtype)


def neural_net_forward(x, w1, b1, w2, b2, *, tb=TB_MAX):
    """x: (B, 25); w1: (25, 12); b1: (1, 12); w2: (12, 12); b2: (1, 12)."""
    B, K = x.shape
    H = w1.shape[1]
    N = w2.shape[1]

    # Fold the module's final `* 10` into layer-2 params (exact up to f32
    # rounding: ReLU(10*z) == 10*ReLU(z) since 10 > 0). Params are tiny, so
    # this host-side scale is negligible.
    w2s = (w2 * 10.0).astype(jnp.float32)
    b2s = (b2 * 10.0).astype(jnp.float32)

    x = x.astype(jnp.float32)
    w1 = w1.astype(jnp.float32)
    b1 = b1.astype(jnp.float32)

    # Batch tile: large to amortize per-grid-step overhead, shrunk to the
    # 8-aligned batch for tiny inputs. No host padding: Pallas masks the
    # boundary block when tb does not divide B.
    tb = max(8, min(tb, ((B + 7) // 8) * 8))
    grid = (pl.cdiv(B, tb),)

    return pl.pallas_call(
        mlp_kernel,
        out_shape=jax.ShapeDtypeStruct((B, N), jnp.float32),
        grid=grid,
        in_specs=[
            pl.BlockSpec((tb, K), lambda i: (i, 0)),   # x tile streams per step
            pl.BlockSpec((K, H), lambda i: (0, 0)),    # params: constant block
            pl.BlockSpec((1, H), lambda i: (0, 0)),    #   index -> VMEM-resident
            pl.BlockSpec((H, N), lambda i: (0, 0)),
            pl.BlockSpec((1, N), lambda i: (0, 0)),
        ],
        out_specs=pl.BlockSpec((tb, N), lambda i: (i, 0)),
        compiler_params=pltpu.CompilerParams(
            dimension_semantics=("parallel",),          # v7x megacore sharding
            vmem_limit_bytes=32 * 1024 * 1024,          # room for 8192-row tiles
        ),
    )(x, w1, b1, w2s, b2s)


def init_params(key, sizes=(25, 12, 12)):
    """Deterministic Xavier-uniform-style init; biases zero (as in init_layer)."""
    params = []
    for i in range(1, len(sizes)):
        fan_in, fan_out = sizes[i - 1], sizes[i]
        key, sub = jax.random.split(key)
        limit = jnp.sqrt(6.0 / (fan_in + fan_out))
        # stored pre-transposed: (in_features, out_features)
        w = jax.random.uniform(sub, (fan_in, fan_out), jnp.float32, -limit, limit)
        b = jnp.zeros((1, fan_out), jnp.float32)
        params.append((w, b))
    return params


def reference_forward(x, w1, b1, w2, b2):
    # Pure f32 reference matching the module semantics (ReLU activations).
    h = jnp.maximum(x @ w1 + b1, 0.0)
    y = jnp.maximum(h @ w2 + b2, 0.0)
    return y * 10.0


if __name__ == "__main__":
    key = jax.random.PRNGKey(0)
    k_x, k_p = jax.random.split(key)

    batch = 8
    sizes = (25, 12, 12)
    x = jax.random.normal(k_x, (batch, sizes[0]), jnp.float32)
    (w1, b1), (w2, b2) = init_params(k_p, sizes)

    out = neural_net_forward(x, w1, b1, w2, b2)
    out = jax.block_until_ready(out)

    ref = reference_forward(x, w1, b1, w2, b2)
    assert out.shape == (batch, sizes[-1])
    assert jnp.allclose(out, ref, atol=1e-4, rtol=1e-4)

    print("KERNEL_OK")
</pallas_src>

<mosaic_0001>
module attributes {stable_mosaic.version = 11 : i64} {
  func.func @mlp_kernel(%arg0: i32, %arg1: memref<8x25xf32, #tpu.memory_space<vmem>>, %arg2: memref<25x12xf32, #tpu.memory_space<vmem>>, %arg3: memref<1x12xf32, #tpu.memory_space<vmem>>, %arg4: memref<12x12xf32, #tpu.memory_space<vmem>>, %arg5: memref<1x12xf32, #tpu.memory_space<vmem>>, %arg6: memref<8x12xf32, #tpu.memory_space<vmem>>) attributes {dimension_semantics = [#tpu.dimension_semantics<parallel>], iteration_bounds = array<i64: 1>, scalar_prefetch = 0 : i64, scratch_operands = 0 : i64, tpu.core_type = #tpu.core_type<tc>, window_params = [{transform_indices = @transform_0, window_bounds = array<i64: 8, 25>}, {pipeline_mode = #tpu.pipeline_mode<synchronous>, transform_indices = @transform_1, window_bounds = array<i64: 25, 12>}, {pipeline_mode = #tpu.pipeline_mode<synchronous>, transform_indices = @transform_2, window_bounds = array<i64: 1, 12>}, {pipeline_mode = #tpu.pipeline_mode<synchronous>, transform_indices = @transform_3, window_bounds = array<i64: 12, 12>}, {pipeline_mode = #tpu.pipeline_mode<synchronous>, transform_indices = @transform_4, window_bounds = array<i64: 1, 12>}, {transform_indices = @transform_5, window_bounds = array<i64: 8, 12>}]} {
    %c0 = arith.constant 0 : index
    %c0_0 = arith.constant 0 : index
    %0 = vector.load %arg1[%c0, %c0_0] : memref<8x25xf32, #tpu.memory_space<vmem>>, vector<8x25xf32>
    %c0_1 = arith.constant 0 : index
    %c0_2 = arith.constant 0 : index
    %1 = vector.load %arg2[%c0_1, %c0_2] : memref<25x12xf32, #tpu.memory_space<vmem>>, vector<25x12xf32>
    %cst = arith.constant dense<0.000000e+00> : vector<8x12xf32>
    %2 = tpu.matmul %0, %1, %cst {dimension_numbers = #tpu.dot_dimension_numbers<[1], [0], [0], [1], [0, 0, 1, 1], [], []>} : vector<8x25xf32>, vector<25x12xf32>, vector<8x12xf32> -> vector<8x12xf32>
    %c0_3 = arith.constant 0 : index
    %c0_4 = arith.constant 0 : index
    %3 = vector.load %arg3[%c0_3, %c0_4] : memref<1x12xf32, #tpu.memory_space<vmem>>, vector<1x12xf32>
    %4 = vector.broadcast %3 : vector<1x12xf32> to vector<8x12xf32>
    %5 = arith.addf %2, %4 : vector<8x12xf32>
    %cst_5 = arith.constant 0.000000e+00 : f32
    %6 = vector.broadcast %cst_5 : f32 to vector<8x12xf32>
    %7 = arith.maximumf %5, %6 : vector<8x12xf32>
    %c0_6 = arith.constant 0 : index
    %c0_7 = arith.constant 0 : index
    %8 = vector.load %arg4[%c0_6, %c0_7] : memref<12x12xf32, #tpu.memory_space<vmem>>, vector<12x12xf32>
    %cst_8 = arith.constant dense<0.000000e+00> : vector<8x12xf32>
    %9 = tpu.matmul %7, %8, %cst_8 {dimension_numbers = #tpu.dot_dimension_numbers<[1], [0], [0], [1], [0, 0, 1, 1], [], []>} : vector<8x12xf32>, vector<12x12xf32>, vector<8x12xf32> -> vector<8x12xf32>
    %c0_9 = arith.constant 0 : index
    %c0_10 = arith.constant 0 : index
    %10 = vector.load %arg5[%c0_9, %c0_10] : memref<1x12xf32, #tpu.memory_space<vmem>>, vector<1x12xf32>
    %11 = vector.broadcast %10 : vector<1x12xf32> to vector<8x12xf32>
    %12 = arith.addf %9, %11 : vector<8x12xf32>
    %cst_11 = arith.constant 0.000000e+00 : f32
    %13 = vector.broadcast %cst_11 : f32 to vector<8x12xf32>
    %14 = arith.maximumf %12, %13 : vector<8x12xf32>
    %c0_12 = arith.constant 0 : index
    %c0_13 = arith.constant 0 : index
    %15 = vector.load %arg6[%c0_12, %c0_13] : memref<8x12xf32, #tpu.memory_space<vmem>>, vector<8x12xf32>
    tpu.vector_store %arg6[%c0_12, %c0_13], %14 {strides = array<i32>} : memref<8x12xf32, #tpu.memory_space<vmem>>, vector<8x12xf32>,
    return
  }
  func.func @transform_0(%arg0: i32) -> (i32, i32) {
    %c0_i32 = arith.constant 0 : i32
    %c0_i32_0 = arith.constant 0 : i32
    return %arg0, %c0_i32 : i32, i32
  }
  func.func @transform_1(%arg0: i32) -> (i32, i32) {
    %c0_i32 = arith.constant 0 : i32
    %c0_i32_0 = arith.constant 0 : i32
    %c0_i32_1 = arith.constant 0 : i32
    return %c0_i32, %c0_i32_0 : i32, i32
  }
  func.func @transform_2(%arg0: i32) -> (i32, i32) {
    %c0_i32 = arith.constant 0 : i32
    %c0_i32_0 = arith.constant 0 : i32
    %c0_i32_1 = arith.constant 0 : i32
    return %c0_i32, %c0_i32_0 : i32, i32
  }
  func.func @transform_3(%arg0: i32) -> (i32, i32) {
    %c0_i32 = arith.constant 0 : i32
    %c0_i32_0 = arith.constant 0 : i32
    %c0_i32_1 = arith.constant 0 : i32
    return %c0_i32, %c0_i32_0 : i32, i32
  }
  func.func @transform_4(%arg0: i32) -> (i32, i32) {
    %c0_i32 = arith.constant 0 : i32
    %c0_i32_0 = arith.constant 0 : i32
    %c0_i32_1 = arith.constant 0 : i32
    return %c0_i32, %c0_i32_0 : i32, i32
  }
  func.func @transform_5(%arg0: i32) -> (i32, i32) {
    %c0_i32 = arith.constant 0 : i32
    %c0_i32_0 = arith.constant 0 : i32
    return %arg0, %c0_i32 : i32, i32
  }
}

</mosaic_0001>

<bundles_post_ra>
// kernel: tpu_custom_call.1
= control target key start
LH: loop header
LB: loop body
LE: loop exit
PB: predicated region body
PF: predicated region fallthrough
CT: control target
= control target key end

     0   :  { %vm37_vm0 = vcmask 1040384   ;;  %v272_v1 = vmov 0.0   ;;  %vm273_vm1 = vmmov 0   ;;  %s335_s0 = inlined_call_operand.vmem [shape: f32[8,25], index: 0, kind: input, shape index: {}]   ;;  %s336_s1 = inlined_call_operand.vmem [shape: f32[25,12], index: 1, kind: input, shape index: {}]   ;;  %s337_s2 = inlined_call_operand.vmem [shape: f32[1,12], index: 2, kind: input, shape index: {}]   ;;  %s338_s3 = inlined_call_operand.vmem [shape: f32[12,12], index: 3, kind: input, shape index: {}]   ;;  %s339_s4 = inlined_call_operand.vmem [shape: f32[1,12], index: 4, kind: input, shape index: {}]   ;;  %s340_s5 = inlined_call_operand.hbm [shape: f32[8,12], index: 5, kind: output, shape index: {}]  }
   0x1   :  { %v25_v0 = vld [vmem:[%s336_s1 + $0x18] sm:$0x1]  ;;  %229 = vmatprep.subr.mxu0 %v272_v1  ;;  %v24_v2 = vld [vmem:[%s336_s1 + $0x10] sm:$0xff]  ;;  %240 = vmatprep.subr.mxu1 %v272_v1 }
   0x2   :  { %230 = vmatpush3.msk.msra.mxu0 %vm37_vm0, %v25_v0  ;;  %237 = vmatprep.mubr.msk.f32.mxu0 %vm273_vm1, %v272_v1 }
   0x3   :  { %10 = vsyncpa [#allocation3], 0  ;;  %231 = vmatprep.subr.mxu0 %v272_v1  ;;  %v23_v3 = vld [vmem:[%s336_s1 + $0x8] sm:$0xff]  ;;  %244 = vmatprep.mubr.msk.f32.mxu1 %vm273_vm1, %v272_v1  ;;  %v22_v4 = vld [vmem:[%s336_s1] sm:$0xff]  ;;  %vm33_vm2 = vcmask 203776   ;;  %vm125_vm3 = vcmask 1043456  }
   0x4   :  { %232 = vmatpush3.msra.mxu0 %v24_v2  ;;  %v21_v5 = vld [vmem:[%s335_s0] sm:$0xff]  ;;  %v113_v6 = vld [vmem:[%s338_s3 + $0x8] sm:$0xf]  ;;  %vm121_vm4 = vcmask 97280   ;;  %s274_s9 = smov [#allocation2]  }
   0x5   :  { %233 = vmatprep.subr.mxu0 %v272_v1  ;;  %241 = vmatpush3.msk.msra.mxu1 %vm125_vm3, %v113_v6  ;;  %v112_v7 = vld [vmem:[%s338_s3] sm:$0xff]  ;;  %s207_s10 = sshll.u32 %s274_s9, 4  ;;  %s208_s10 = int_to_ptr.vmem [resolvable:$true] %s207_s10 }
   0x6   :  { %234 = vmatpush3.msra.mxu0 %v23_v3  ;;  %242 = vmatprep.subr.mxu1 %v272_v1  ;;  %v215_v8 = vld [vmem:[%s337_s2] ss:$0 sm:$0xff]  ;;  %s250_s3 = scalar_lea.vmem %s208_s10, 128  ;;  %p255_p1 = scmp.lt.s32.totalorder %s208_s10, %s208_s10 }
   0x7   :  { %235 = vmatprep.subr.mxu0 %v272_v1  ;;  %243 = vmatpush3.msra.mxu1 %v112_v7  ;;  %v218_v13 = vld [vmem:[%s339_s4] ss:$0 sm:$0xff]  ;;  %p251_p0 = scmp.ne.s32.totalorder %s208_s10, %s250_s3  ;;  %p256_p2 = scmp.lt.s32.totalorder %s250_s3, %s250_s3 }
   0x8   :  { %236 = vmatpush3.msra.mxu0 %v22_v4 }
   0x9   :  { %238 = vmatmul.mubr.msk.f32.vlgmr.msra.gmra.mxu0 %vm33_vm2, %v21_v5  ;;  %p257_p3 = por %p256_p2, %p255_p1 }
   0xb   :  { %p258_p4 = pnand %p257_p3, %p251_p0 }
  0xc9   :  { %v107_v9 = vpop.f32.mrf.mxu0 }
  0xca   :  { %v108_v10 = vadd.f32 %v215_v8, %v107_v9 }
  0xcb   :  { %v239_v11 = vpop.f32.mrf.mxu0 }
  0xcc   :  { %v111_v12 = vmax.f32 %v108_v10, 0.0 }
  0xce   :  { %245 = vmatmul.mubr.msk.f32.vlgmr.msra.gmra.mxu1 %vm121_vm4, %v111_v12 }
 0x18e   :  { %v195_v14 = vpop.f32.mrf.mxu1 }
 0x18f   :  { %v196_v15 = vadd.f32 %v218_v13, %v195_v14 }
 0x190   :  { %v246_v16 = vpop.f32.mrf.mxu1 }
 0x191   :  { %v199_v17 = vmax.f32 %v196_v15, 0.0 }
 0x193   :  { %200 = vst.msk [vmem:[#allocation2] sm:$0xff] %vm121_vm4, %v199_v17 }
 0x194   :  { %261 = shalt.err (!%p258_p4)
}
 0x195   :  { %210 = dma.vmem_to_hbm [thread:$0]  %s208_s10, 128, %s340_s5, [#allocation3]  }
 0x196   :  { %270 = dma.done.wait [#allocation3], 128  }
 0x197   :  { %271 = vsyncadd [#allocation3], 4294967168 }
 0x198   :  { %214 = vsyncpa [#allocation3], 1 }

</bundles_post_ra>
